<compile_context>
chip_gen: v7x
topology: tpu7x:2x2x1
jax: 0.10.0
libtpu: 0.0.40
codegen_flags: <defaults>
</compile_context>

<pallas_src>
import math

import jax
import jax.numpy as jnp
from jax.experimental import pallas as pl
from jax.experimental.pallas import tpu as pltpu


def _cdiv(a: int, b: int) -> int:
    return -(-a // b)


def _round_up(x: int, m: int) -> int:
    return _cdiv(x, m) * m


def _rel_emb_kernel(alpha_ref, weight_ref, out_ref):
    # One MXU matmul per tile; f32 accumulation, cast on the final store.
    out_ref[...] = jnp.dot(
        alpha_ref[...], weight_ref[...], preferred_element_type=jnp.float32
    ).astype(out_ref.dtype)


def _tpu_generation_params():
    """Return (vmem_budget, vmem_limit_cap, num_tensorcores) for this chip."""
    vmem_cap = 128 * 1024 * 1024
    n_tc = 1
    try:
        vmem_cap = int(pltpu.get_tpu_info().vmem_capacity_bytes)
    except Exception:
        pass
    try:
        kind = jax.devices()[0].device_kind.lower()
    except Exception:
        kind = ""
    if "v7" in kind:
        n_tc = 2
        vmem_cap = min(vmem_cap, 64 * 1024 * 1024)
    if vmem_cap <= 64 * 1024 * 1024:
        # v7x-class part: 64 MiB physical per TC, 2 TCs -> stay <= ~30 MiB.
        return 22 * 1024 * 1024, 30 * 1024 * 1024, max(n_tc, 2)
    # v5e / v6e: 128 MiB VMEM -> bias toward the biggest tile that fits.
    return 56 * 1024 * 1024, 96 * 1024 * 1024, n_tc


def _balanced_tile(total: int, t_req: int, align: int) -> int:
    """Largest tile <= ~t_req (multiple of `align`) with balanced blocks.

    Falls back to the full extent (always a legal block shape) when the
    balanced tile would cover the whole axis anyway.
    """
    if total <= align:
        return total
    t_req = max(align, min(t_req, _round_up(total, align)))
    n_blocks = _cdiv(total, t_req)
    t = max(align, _round_up(_cdiv(total, n_blocks), align))
    return total if t >= total else t


def _choose_tiles(two_r, nb, in_feats, in_isz, out_isz, tm_req, budget,
                  n_tc, m_align):
    """Pick (tm, tn).  tn == in_feats (full-extent block) unless the working
    set forces an N grid axis (only when in_feats is a multiple of 128)."""

    def working_set(tm, tn):
        # Double-buffered alpha tile + resident weight tile + output tile.
        return 2 * (tm * nb + nb * tn) * in_isz + 2 * tm * tn * out_isz

    # On multi-TC chips make sure the M grid splits across the cores.
    if n_tc > 1 and two_r >= 2 * m_align:
        tm_req = min(tm_req, _round_up(_cdiv(two_r, n_tc), m_align))
    tm = _balanced_tile(two_r, tm_req, m_align)

    tn = in_feats
    can_tile_n = (in_feats % 128 == 0) and (in_feats > 128)
    if can_tile_n and working_set(tm, tn) > budget:
        # Prefer shrinking N: keeps M tiles large and stores lane-dense.
        while tn > 128 and working_set(tm, tn) > budget:
            tn = max(128, _round_up(tn // 2, 128))
    while tm > m_align and working_set(tm, tn) > budget:
        tm = max(m_align, _round_up(tm // 2, m_align))
    return tm, tn


def _rel_emb_pallas(alpha: jax.Array, weight: jax.Array, *,
                    tm_req, out_dtype) -> jax.Array:
    two_r, nb = alpha.shape
    nb2, in_feats = weight.shape
    assert nb == nb2

    in_isz = jnp.dtype(alpha.dtype).itemsize
    out_isz = jnp.dtype(out_dtype).itemsize
    # Sublane packing of the output dtype (8 rows for f32, 16 for bf16).
    m_align = max(8, 32 // out_isz)

    budget, limit_cap, n_tc = _tpu_generation_params()
    if tm_req is None:
        tm_req = 512 if budget < 32 * 1024 * 1024 else 1024

    tm, tn = _choose_tiles(two_r, nb, in_feats, in_isz, out_isz,
                           tm_req, budget, n_tc, m_align)
    grid_m = _cdiv(two_r, tm)
    grid_n = _cdiv(in_feats, tn)

    est = 2 * (tm * nb + nb * tn) * in_isz + 2 * tm * tn * out_isz
    vmem_limit = int(min(limit_cap,
                         max(8 * 1024 * 1024, est + 2 * 1024 * 1024)))

    cost = pl.CostEstimate(
        flops=2 * two_r * nb * in_feats,
        transcendentals=0,
        bytes_accessed=(two_r * nb + nb * in_feats) * in_isz
        + two_r * in_feats * out_isz,
    )

    if grid_n == 1:
        grid = (grid_m,)
        in_specs = [
            pl.BlockSpec((tm, nb), lambda i: (i, 0)),     # alpha marches over M
            pl.BlockSpec((nb, tn), lambda i: (0, 0)),     # weight resident
        ]
        out_spec = pl.BlockSpec((tm, tn), lambda i: (i, 0))
        dims = ("parallel",)
    else:
        grid = (grid_m, grid_n)
        in_specs = [
            pl.BlockSpec((tm, nb), lambda i, j: (i, 0)),
            pl.BlockSpec((nb, tn), lambda i, j: (0, j)),
        ]
        out_spec = pl.BlockSpec((tm, tn), lambda i, j: (i, j))
        dims = ("parallel", "parallel")

    return pl.pallas_call(
        _rel_emb_kernel,
        out_shape=jax.ShapeDtypeStruct((two_r, in_feats), out_dtype),
        grid_spec=pltpu.PrefetchScalarGridSpec(
            num_scalar_prefetch=0,
            grid=grid,
            in_specs=in_specs,
            out_specs=out_spec,
        ),
        compiler_params=pltpu.CompilerParams(
            dimension_semantics=dims,
            vmem_limit_bytes=vmem_limit,
        ),
        cost_estimate=cost,
    )(alpha, weight)


def bases_rel_emb_forward(alpha: jax.Array, weight: jax.Array, *,
                          tm=None, out_dtype=None,
                          force_pallas: bool = False) -> jax.Array:
    """Forward of BasesRelEmbLayer: alpha @ weight.

    alpha: (2*num_rels, num_bases), weight: (num_bases, in_feats).
    """
    two_r, nb = alpha.shape
    nb2, in_feats = weight.shape
    assert nb == nb2
    if out_dtype is None:
        out_dtype = alpha.dtype

    # For tiny outputs the pallas_call fixed cost dominates; use plain XLA dot.
    if not force_pallas and two_r * in_feats < 16384:
        return jnp.dot(alpha, weight,
                       preferred_element_type=jnp.float32).astype(out_dtype)

    return _rel_emb_pallas(alpha, weight, tm_req=tm, out_dtype=out_dtype)


def _xavier_uniform(key, shape, dtype=jnp.float32):
    # Matches torch.nn.init.xavier_uniform_ for 2-D tensors.
    fan_out, fan_in = shape
    bound = math.sqrt(6.0 / (fan_in + fan_out))
    return jax.random.uniform(key, shape, dtype=dtype, minval=-bound, maxval=bound)


if __name__ == "__main__":
    key = jax.random.PRNGKey(0)
    k_w, k_a, k_w2, k_a2, k_w3, k_a3 = jax.random.split(key, 6)

    # --- Case 1: module-default small shapes, forced through the Pallas path.
    num_bases, num_rels, in_feats = 4, 8, 32
    weight = _xavier_uniform(k_w, (num_bases, in_feats))
    alpha = _xavier_uniform(k_a, (2 * num_rels, num_bases))

    out = bases_rel_emb_forward(alpha, weight, force_pallas=True)
    jax.block_until_ready(out)
    ref = alpha @ weight
    assert out.shape == (2 * num_rels, in_feats)
    assert jnp.allclose(out, ref, atol=1e-4, rtol=1e-4)

    # --- Case 2: larger shapes exercising a multi-step M grid with a
    #     resident weight block (no padding, no post-slice).
    nb2_, nr2_, nf2_ = 8, 256, 256
    weight2 = _xavier_uniform(k_w2, (nb2_, nf2_))
    alpha2 = _xavier_uniform(k_a2, (2 * nr2_, nb2_))

    out2 = bases_rel_emb_forward(alpha2, weight2, tm=128)
    jax.block_until_ready(out2)
    ref2 = alpha2 @ weight2
    assert out2.shape == (2 * nr2_, nf2_)
    assert jnp.allclose(out2, ref2, atol=1e-4, rtol=1e-4)

    # --- Case 3: ragged M and in_feats not a multiple of 128 -> Pallas masks
    #     the edge blocks on store; no wrapper pad/slice needed.
    nb3_, nr3_, nf3_ = 8, 300, 200
    weight3 = _xavier_uniform(k_w3, (nb3_, nf3_))
    alpha3 = _xavier_uniform(k_a3, (2 * nr3_, nb3_))

    out3 = bases_rel_emb_forward(alpha3, weight3, force_pallas=True)
    jax.block_until_ready(out3)
    ref3 = alpha3 @ weight3
    assert out3.shape == (2 * nr3_, nf3_)
    assert jnp.allclose(out3, ref3, atol=1e-4, rtol=1e-4)

    print("KERNEL_OK")
</pallas_src>

<mosaic_0001>
module attributes {stable_mosaic.version = 11 : i64} {
  func.func @_rel_emb_kernel(%arg0: i32, %arg1: memref<16x4xf32, #tpu.memory_space<vmem>>, %arg2: memref<4x32xf32, #tpu.memory_space<vmem>>, %arg3: memref<16x32xf32, #tpu.memory_space<vmem>>) attributes {dimension_semantics = [#tpu.dimension_semantics<parallel>], iteration_bounds = array<i64: 1>, scalar_prefetch = 0 : i64, scratch_operands = 0 : i64, tpu.core_type = #tpu.core_type<tc>, window_params = [{transform_indices = @transform_0, window_bounds = array<i64: 16, 4>}, {pipeline_mode = #tpu.pipeline_mode<synchronous>, transform_indices = @transform_1, window_bounds = array<i64: 4, 32>}, {transform_indices = @transform_2, window_bounds = array<i64: 16, 32>}]} {
    %c0 = arith.constant 0 : index
    %c0_0 = arith.constant 0 : index
    %0 = vector.load %arg1[%c0, %c0_0] : memref<16x4xf32, #tpu.memory_space<vmem>>, vector<16x4xf32>
    %c0_1 = arith.constant 0 : index
    %c0_2 = arith.constant 0 : index
    %1 = vector.load %arg2[%c0_1, %c0_2] : memref<4x32xf32, #tpu.memory_space<vmem>>, vector<4x32xf32>
    %cst = arith.constant dense<0.000000e+00> : vector<16x32xf32>
    %2 = tpu.matmul %0, %1, %cst {dimension_numbers = #tpu.dot_dimension_numbers<[1], [0], [0], [1], [0, 0, 1, 1], [], []>} : vector<16x4xf32>, vector<4x32xf32>, vector<16x32xf32> -> vector<16x32xf32>
    %c0_3 = arith.constant 0 : index
    %c0_4 = arith.constant 0 : index
    %3 = vector.load %arg3[%c0_3, %c0_4] : memref<16x32xf32, #tpu.memory_space<vmem>>, vector<16x32xf32>
    tpu.vector_store %arg3[%c0_3, %c0_4], %2 {strides = array<i32>} : memref<16x32xf32, #tpu.memory_space<vmem>>, vector<16x32xf32>,
    return
  }
  func.func @transform_0(%arg0: i32) -> (i32, i32) {
    %c0_i32 = arith.constant 0 : i32
    %c0_i32_0 = arith.constant 0 : i32
    return %arg0, %c0_i32 : i32, i32
  }
  func.func @transform_1(%arg0: i32) -> (i32, i32) {
    %c0_i32 = arith.constant 0 : i32
    %c0_i32_0 = arith.constant 0 : i32
    %c0_i32_1 = arith.constant 0 : i32
    return %c0_i32, %c0_i32_0 : i32, i32
  }
  func.func @transform_2(%arg0: i32) -> (i32, i32) {
    %c0_i32 = arith.constant 0 : i32
    %c0_i32_0 = arith.constant 0 : i32
    return %arg0, %c0_i32 : i32, i32
  }
}

</mosaic_0001>

<bundles_post_ra>
// kernel: tpu_custom_call.1
= control target key start
LH: loop header
LB: loop body
LE: loop exit
PB: predicated region body
PF: predicated region fallthrough
CT: control target
= control target key end

     0   :  { %vm22_vm0 = vcmask 1043456   ;;  %vm15_vm1 = vcmask 31744   ;;  %s197_s0 = inlined_call_operand.vmem [shape: f32[16,4], index: 0, kind: input, shape index: {}]   ;;  %s198_s1 = inlined_call_operand.vmem [shape: f32[4,32], index: 1, kind: input, shape index: {}]   ;;  %s199_s2 = inlined_call_operand.hbm [shape: f32[16,32], index: 2, kind: output, shape index: {}]  }
   0x1   :  { %v14_v0 = vld [vmem:[%s198_s1] sm:$0xf]  ;;  %v13_v2 = vld [vmem:[%s197_s0 + $0x8] sm:$0xff] }
   0x2   :  { %v12_v1 = vld [vmem:[%s197_s0] sm:$0xff]  ;;  %126 = vmatprep.subr.msk.mxu0 %vm22_vm0, %v14_v0 }
   0x3   :  { %128 = vmatprep.mubr.msk.f32.mxu0 %vm15_vm1, %v12_v1 }
   0x4   :  { %7 = vsyncpa [#allocation3], 0  ;;  %127 = vmatpush3.msk.msra.mxu0 %vm22_vm0, %v14_v0  ;;  %s158_s15 = smov [#allocation2]   ;;  %vm101_vm2 = vcmask 261120  }
   0x5   :  { %129 = vmatmul.mubr.msk.f32.vlgmr.msra.gmra.mrb[0].mxu0 %vm15_vm1, %v13_v2  ;;  %s109_s16 = sshll.u32 %s158_s15, 4  ;;  %s110_s16 = int_to_ptr.vmem [resolvable:$true] %s109_s16 }
   0x6   :  { %s134_s1 = scalar_lea.vmem %s110_s16, 256  ;;  %p139_p1 = scmp.lt.s32.totalorder %s110_s16, %s110_s16 }
   0x7   :  { %p135_p0 = scmp.ne.s32.totalorder %s110_s16, %s134_s1  ;;  %p140_p2 = scmp.lt.s32.totalorder %s134_s1, %s134_s1 }
   0x9   :  { %p141_p3 = por %p140_p2, %p139_p1 }
   0xb   :  { %p142_p4 = pnand %p141_p3, %p135_p0 }
  0xd8   :  { %v130_v3 = vpop.f32.mrb[0].mxu0 }
  0xd9   :  { %103 = vst.msk [vmem:[#allocation2 + $0x8] sm:$0xff] %vm101_vm2, %v130_v3  ;;  %v92_v4 = vpop.f32.mrb[1].mxu0 }
  0xda   :  { %102 = vst.msk [vmem:[#allocation2] sm:$0xff] %vm101_vm2, %v92_v4 }
  0xdb   :  { %145 = shalt.err (!%p142_p4)
}
  0xdc   :  { %s146_s18 = scalar_lea.hbm %s199_s2, 256 }
  0xdd   :  { %p147_p5 = scmp.ne.s32.totalorder %s199_s2, %s146_s18  ;;  %p150_p6 = scmp.lt.u32.totalorder %s146_s18, %s199_s2 }
  0xdf   :  { %p152_p7 = pnand %p150_p6, %p147_p5 }
  0xe1   :  { %155 = shalt.err (!%p152_p7)
}
  0xe2   :  { %s159_s23 = smov 128   ;;  %s160_s24 = smov 8  }
  0xe3   :  { %115 = dma.vmem_to_hbm [thread:$0]  %s110_s16, 256, %s199_s2, [#allocation3], %s159_s23, %s159_s23, %s160_s24  }
  0xe4   :  { %156 = dma.done.wait [#allocation3], 256  }
  0xe5   :  { %157 = vsyncadd [#allocation3], 4294967040 }
  0xe6   :  { %119 = vsyncpa [#allocation3], 1 }

</bundles_post_ra>
